<compile_context>
chip_gen: v5e
topology: v5e:2x2
jax: 0.10.0
libtpu: 0.0.40
codegen_flags: <defaults>
</compile_context>

<pallas_src>
import functools

import jax
import jax.numpy as jnp
from jax.experimental import pallas as pl
from jax.experimental.pallas import tpu as pltpu


# ---------------------------------------------------------------------------
# Tiling helper
# ---------------------------------------------------------------------------
def _pick_rows(h1, w1, target):
    """Output rows (along H1) handled per grid step.

    Every block's minor dim must be a multiple of 128 or the full flattened
    spatial extent.  If W1 is not a multiple of 128 we use one row-tile per
    image (tiny shapes fit in a single tile anyway), so halo blocks are only
    ever used when their (32, W1) lane size is legal and dense.
    """
    if w1 % 128 != 0:
        return h1
    best = 1
    for g in range(1, h1 + 1):
        if h1 % g == 0 and g * w1 <= target:
            best = g
    return best


def _compiler_params():
    return pltpu.CompilerParams(
        dimension_semantics=("parallel", "parallel"),
        vmem_limit_bytes=48 * 1024 * 1024,   # > v5e/v6e defaults, < v7x physical
    )


# ---------------------------------------------------------------------------
# Kernel 1: conv1 (3x3, stride 2, pad 1) + bias, fused in-kernel im2col,
#           channel-major output, per-tile BatchNorm partial statistics.
# ---------------------------------------------------------------------------
def _conv1_kernel(*refs, wout, cin, has_halo, pos):
    # refs (in order): xm [, xh], w, b, v_out, sum_out, sq_out
    #   xm_ref : (1, 4*cin, pos)  space-to-depth tile; plane rho=(hp*2+wp)*cin+ci
    #            holds x[ci, 2r+hp, 2c+wp] at lane r*wout+c
    #   xh_ref : (1, 4*cin, wout) planes of the image row above the tile
    if has_halo:
        xm_ref, xh_ref, w_ref, b_ref, v_ref, sum_ref, sq_ref = refs
    else:
        xm_ref, w_ref, b_ref, v_ref, sum_ref, sq_ref = refs
    i = pl.program_id(1)

    xm = xm_ref[0]                                      # (4*cin, pos)
    if has_halo:
        xh = jnp.where(i > 0, xh_ref[0], 0.0)           # zero = conv top padding
    else:
        xh = jnp.zeros((4 * cin, wout), jnp.float32)
    zc = jnp.zeros((4 * cin, 1), jnp.float32)
    # Lane j of y holds flattened output position (j - wout - 1) rel. tile start
    # (one zero lane of left padding + one halo image row).
    y = jnp.concatenate([zc, xh, xm], axis=1)           # (4*cin, pos + wout + 1)

    col = jax.lax.broadcasted_iota(jnp.int32, (1, pos), 1) % wout
    at_left = col == 0

    # The 9 stride-2 taps are lane shifts of y; stack along sublanes into a
    # single (9*cin, pos) MXU operand (dense K, large N).
    taps = []
    for ki in range(3):
        for kj in range(3):
            hp = 0 if ki == 1 else 1
            wp = 0 if kj == 1 else 1
            dr = -1 if ki == 0 else 0
            dc = -1 if kj == 0 else 0
            base = (hp * 2 + wp) * cin
            start = (dr + 1) * wout + (dc + 1)
            t = y[base:base + cin, start:start + pos]   # (cin, pos)
            if kj == 0:                                 # left conv padding
                t = jnp.where(at_left, 0.0, t)
            taps.append(t)
    pat = jnp.concatenate(taps, axis=0)                 # (9*cin, pos)

    acc = jnp.dot(w_ref[...], pat, preferred_element_type=jnp.float32)
    acc = acc + b_ref[...]                              # (32, pos)

    v_ref[...] = acc                                    # lane-dense, channel-major
    # Per-tile BatchNorm partials (single-pass E[x], E[x^2]; guarded in JAX).
    sum_ref[...] = jnp.sum(acc, axis=1, keepdims=True)[None]
    sq_ref[...] = jnp.sum(acc * acc, axis=1, keepdims=True)[None]


def conv1_with_stats(x_cm, w_cm, b1, *, n, h1, w1, target=16384):
    cin4, d = x_cm.shape[1], x_cm.shape[2]
    cin = cin4 // 4
    th = _pick_rows(h1, w1, target)
    n_h = h1 // th
    pos = th * w1
    has_halo = n_h > 1
    kern = functools.partial(_conv1_kernel, wout=w1, cin=cin,
                             has_halo=has_halo, pos=pos)

    in_specs = [pl.BlockSpec((1, cin4, pos), lambda nn, ii: (nn, 0, ii))]
    args = [x_cm]
    if has_halo:
        in_specs.append(pl.BlockSpec(
            (1, cin4, w1),
            lambda nn, ii: (nn, 0, jnp.maximum(ii * th - 1, 0))))
        args.append(x_cm)
    in_specs += [pl.BlockSpec((32, 9 * cin), lambda nn, ii: (0, 0)),
                 pl.BlockSpec((32, 1), lambda nn, ii: (0, 0))]
    args += [w_cm, b1.reshape(32, 1)]

    t = n * n_h
    out_shape = (jax.ShapeDtypeStruct((n * 32, d), jnp.float32),
                 jax.ShapeDtypeStruct((t, 32, 1), jnp.float32),
                 jax.ShapeDtypeStruct((t, 32, 1), jnp.float32))
    out_specs = [pl.BlockSpec((32, pos), lambda nn, ii: (nn, ii)),
                 pl.BlockSpec((1, 32, 1), lambda nn, ii: (nn * n_h + ii, 0, 0)),
                 pl.BlockSpec((1, 32, 1), lambda nn, ii: (nn * n_h + ii, 0, 0))]

    return pl.pallas_call(
        kern,
        out_shape=out_shape,
        grid_spec=pltpu.PrefetchScalarGridSpec(
            num_scalar_prefetch=0, grid=(n, n_h),
            in_specs=in_specs, out_specs=out_specs),
        compiler_params=_compiler_params(),
    )(*args)


# ---------------------------------------------------------------------------
# Kernel 2: BN-apply + ReLU + 3x3 conv (conv3 folded) + bias + ReLU,
#           channel-major in and out (output is directly NCHW).
# ---------------------------------------------------------------------------
def _bn_conv_kernel(*refs, wout, has_halo, pos):
    if has_halo:
        xm_ref, xt_ref, xb_ref, w_ref, b_ref, a_ref, c_ref, o_ref = refs
    else:
        xm_ref, w_ref, b_ref, a_ref, c_ref, o_ref = refs
    i = pl.program_id(1)
    n_h = pl.num_programs(1)

    a = a_ref[...]                                      # (32, 1) BN scale
    c = c_ref[...]                                      # (32, 1) BN shift

    def bn_relu(v):
        return jnp.maximum(v * a + c, 0.0)

    mid = bn_relu(xm_ref[...])                          # (32, pos)
    if has_halo:
        # Halo image rows, zeroed at image top/bottom (conv zero padding is
        # applied to the BN+ReLU'd activation).
        top = jnp.where(i > 0, bn_relu(xt_ref[...]), 0.0)        # (32, wout)
        bot = jnp.where(i < n_h - 1, bn_relu(xb_ref[...]), 0.0)  # (32, wout)
    else:
        top = jnp.zeros((32, wout), jnp.float32)
        bot = jnp.zeros((32, wout), jnp.float32)
    zc = jnp.zeros((32, 1), jnp.float32)
    # Lane j of y holds flattened position (j - wout - 1) relative to the tile.
    y = jnp.concatenate([zc, top, mid, bot, zc], axis=1)  # (32, pos + 2*wout + 2)

    col = jax.lax.broadcasted_iota(jnp.int32, (1, pos), 1) % wout
    at_left = col == 0
    at_right = col == wout - 1

    # 3 accumulating MXU matmuls (taps grouped by kernel row ki -> K = 96);
    # each tap is a lane-shifted view of y with column-edge masking.
    acc = jnp.zeros((32, pos), jnp.float32)
    for ki in range(3):
        rows = []
        for kj in range(3):
            t = y[:, ki * wout + kj: ki * wout + kj + pos]   # (32, pos)
            if kj == 0:
                t = jnp.where(at_left, 0.0, t)
            elif kj == 2:
                t = jnp.where(at_right, 0.0, t)
            rows.append(t)
        grp = jnp.concatenate(rows, axis=0)                  # (96, pos)
        wg = w_ref[:, ki * 96:(ki + 1) * 96]                 # (32, 96)
        acc = acc + jnp.dot(wg, grp, preferred_element_type=jnp.float32)

    o_ref[...] = jnp.maximum(acc + b_ref[...], 0.0)


def bn_relu_conv23(v1, w_cm, b23, a, c, *, n, h1, w1, target=8192):
    d = h1 * w1
    th = _pick_rows(h1, w1, target)
    n_h = h1 // th
    pos = th * w1
    has_halo = n_h > 1
    kern = functools.partial(_bn_conv_kernel, wout=w1, has_halo=has_halo, pos=pos)

    in_specs = [pl.BlockSpec((32, pos), lambda nn, ii: (nn, ii))]
    args = [v1]
    if has_halo:
        in_specs += [
            pl.BlockSpec((32, w1),
                         lambda nn, ii: (nn, jnp.maximum(ii * th - 1, 0))),
            pl.BlockSpec((32, w1),
                         lambda nn, ii: (nn, jnp.minimum(ii * th + th, h1 - 1))),
        ]
        args += [v1, v1]
    in_specs += [pl.BlockSpec((32, 288), lambda nn, ii: (0, 0)),
                 pl.BlockSpec((32, 1), lambda nn, ii: (0, 0)),
                 pl.BlockSpec((32, 1), lambda nn, ii: (0, 0)),
                 pl.BlockSpec((32, 1), lambda nn, ii: (0, 0))]
    args += [w_cm, b23.reshape(32, 1), a.reshape(32, 1), c.reshape(32, 1)]

    return pl.pallas_call(
        kern,
        out_shape=jax.ShapeDtypeStruct((n * 32, d), jnp.float32),
        grid_spec=pltpu.PrefetchScalarGridSpec(
            num_scalar_prefetch=0, grid=(n, n_h),
            in_specs=in_specs,
            out_specs=pl.BlockSpec((32, pos), lambda nn, ii: (nn, ii))),
        compiler_params=_compiler_params(),
    )(*args)


# ---------------------------------------------------------------------------
# Forward pass
# ---------------------------------------------------------------------------
def model_forward(x_nchw, params):
    n, cin, h, w = x_nchw.shape
    assert h % 2 == 0 and w % 2 == 0, "even spatial dims expected (stride-2 conv)"
    # TODO(synk): odd H/W would need an extra padded row/column in the
    # space-to-depth layout; the module's shapes (256, and the test 16) are even.
    h1, w1 = h // 2, w // 2
    d = h1 * w1

    # Space-to-depth, channel-major view of the input (one small XLA pass):
    #   x_cm[n, (hp*2+wp)*cin + ci, r*w1 + c] = x[n, ci, 2r+hp, 2c+wp]
    x_cm = (x_nchw.reshape(n, cin, h1, 2, w1, 2)
            .transpose(0, 3, 5, 1, 2, 4)
            .reshape(n, 4 * cin, d))

    # conv1 weights HWIO -> (Cout, ki*kj*ci), matching the in-kernel tap order.
    w1_cm = params["w1"].transpose(3, 0, 1, 2).reshape(32, 9 * cin)

    v1, psum, psq = conv1_with_stats(x_cm, w1_cm, params["b1"], n=n, h1=h1, w1=w1)

    # BatchNorm (training-mode batch statistics, biased variance) reduced to a
    # per-channel affine y = a*x + c, applied inside kernel 2.
    # Single-pass E[x^2]-E[x]^2 (guarded >= 0); adequate at these magnitudes.
    m1 = n * d
    mean = jnp.sum(psum[:, :, 0], axis=0) / m1
    ex2 = jnp.sum(psq[:, :, 0], axis=0) / m1
    var = jnp.maximum(ex2 - mean * mean, 0.0)
    a = params["gamma1"] * jax.lax.rsqrt(var + 1e-5)
    c = params["beta1"] - mean * a

    # conv3 (1x1) folded into conv2 (exact: no nonlinearity between them).
    w3m = params["w3"].reshape(32, 32)
    w23 = jnp.einsum("ijkl,lm->ijkm", params["w2"], w3m)     # (3,3,32,32)
    b23 = params["b2"] @ w3m + params["b3"]
    w23_cm = jnp.transpose(w23, (3, 0, 1, 2)).reshape(32, 288)

    out = bn_relu_conv23(v1, w23_cm, b23, a, c, n=n, h1=h1, w1=w1)
    return out.reshape(n, 32, h1, w1)                         # already NCHW


# ---------------------------------------------------------------------------
# Pure-JAX reference for validation
# ---------------------------------------------------------------------------
def reference(x_nchw, params):
    x = jnp.transpose(x_nchw, (0, 2, 3, 1))
    dn = ("NHWC", "HWIO", "NHWC")
    v1 = jax.lax.conv_general_dilated(
        x, params["w1"], (2, 2), [(1, 1), (1, 1)], dimension_numbers=dn)
    v1 = v1 + params["b1"]
    mean = jnp.mean(v1, axis=(0, 1, 2), keepdims=True)
    var = jnp.mean(jnp.square(v1 - mean), axis=(0, 1, 2), keepdims=True)
    v2 = (v1 - mean) * jax.lax.rsqrt(var + 1e-5) * params["gamma1"] + params["beta1"]
    v3 = jnp.maximum(v2, 0.0)
    v4 = jax.lax.conv_general_dilated(
        v3, params["w2"], (1, 1), [(1, 1), (1, 1)], dimension_numbers=dn)
    v4 = v4 + params["b2"]
    v5 = jax.lax.conv_general_dilated(
        v4, params["w3"], (1, 1), [(0, 0), (0, 0)], dimension_numbers=dn)
    v5 = v5 + params["b3"]
    v6 = jnp.maximum(v5, 0.0)
    return jnp.transpose(v6, (0, 3, 1, 2))


if __name__ == "__main__":
    key = jax.random.PRNGKey(0)
    k_x, k_w1, k_b1, k_w2, k_b2, k_w3, k_b3 = jax.random.split(key, 7)

    # Small shapes consistent with the module (original was 1x3x256x256).
    x = jax.random.normal(k_x, (2, 3, 16, 16), dtype=jnp.float32)

    params = {
        # Conv weights stored in HWIO (kh, kw, Cin, Cout).
        "w1": jax.random.normal(k_w1, (3, 3, 3, 32), dtype=jnp.float32) * 0.1,
        "b1": jax.random.normal(k_b1, (32,), dtype=jnp.float32) * 0.1,
        "gamma1": jnp.ones((32,), dtype=jnp.float32),   # BatchNorm2d init
        "beta1": jnp.zeros((32,), dtype=jnp.float32),
        "w2": jax.random.normal(k_w2, (3, 3, 32, 32), dtype=jnp.float32) * 0.1,
        "b2": jax.random.normal(k_b2, (32,), dtype=jnp.float32) * 0.1,
        "w3": jax.random.normal(k_w3, (1, 1, 32, 32), dtype=jnp.float32) * 0.1,
        "b3": jax.random.normal(k_b3, (32,), dtype=jnp.float32) * 0.1,
    }

    fwd = jax.jit(model_forward)
    out = jax.block_until_ready(fwd(x, params))
    ref = jax.block_until_ready(reference(x, params))

    assert out.shape == (2, 32, 8, 8), out.shape
    max_err = float(jnp.max(jnp.abs(out - ref)))
    # conv2/conv3 weight fold + single-pass BN stats + regrouped summation
    # order shift fp32 rounding slightly vs. the unfused reference.
    assert jnp.allclose(out, ref, atol=2e-4, rtol=2e-4), max_err
    print("KERNEL_OK")
</pallas_src>

<mosaic_0001>
module attributes {stable_mosaic.version = 11 : i64} {
  func.func @_conv1_kernel(%arg0: i32, %arg1: i32, %arg2: memref<1x12x64xf32, #tpu.memory_space<vmem>>, %arg3: memref<32x27xf32, #tpu.memory_space<vmem>>, %arg4: memref<32x1xf32, #tpu.memory_space<vmem>>, %arg5: memref<32x64xf32, #tpu.memory_space<vmem>>, %arg6: memref<1x32x1xf32, #tpu.memory_space<vmem>>, %arg7: memref<1x32x1xf32, #tpu.memory_space<vmem>>) attributes {dimension_semantics = [#tpu.dimension_semantics<parallel>, #tpu.dimension_semantics<parallel>], iteration_bounds = array<i64: 2, 1>, scalar_prefetch = 0 : i64, scratch_operands = 0 : i64, tpu.core_type = #tpu.core_type<tc>, window_params = [{transform_indices = @transform_0, window_bounds = array<i64: 1, 12, 64>}, {pipeline_mode = #tpu.pipeline_mode<synchronous>, transform_indices = @transform_1, window_bounds = array<i64: 32, 27>}, {pipeline_mode = #tpu.pipeline_mode<synchronous>, transform_indices = @transform_2, window_bounds = array<i64: 32, 1>}, {transform_indices = @transform_3, window_bounds = array<i64: 32, 64>}, {transform_indices = @transform_4, window_bounds = array<i64: 1, 32, 1>}, {transform_indices = @transform_5, window_bounds = array<i64: 1, 32, 1>}]} {
    %c0 = arith.constant 0 : index
    %c0_0 = arith.constant 0 : index
    %c0_1 = arith.constant 0 : index
    %0 = vector.load %arg2[%c0, %c0_0, %c0_1] : memref<1x12x64xf32, #tpu.memory_space<vmem>>, vector<1x12x64xf32>
    %1 = vector.shape_cast %0 : vector<1x12x64xf32> to vector<12x64xf32>
    %cst = arith.constant 0.000000e+00 : f32
    %2 = vector.broadcast %cst : f32 to vector<12x8xf32>
    %cst_2 = arith.constant 0.000000e+00 : f32
    %3 = vector.broadcast %cst_2 : f32 to vector<12x1xf32>
    %4 = tpu.concatenate %3, %2, %1 in 1 : vector<12x1xf32>, vector<12x8xf32>, vector<12x64xf32> -> vector<12x73xf32>
    %5 = tpu.iota {dimensions = array<i32: 1>} : vector<1x64xi32>
    %c8_i32 = arith.constant 8 : i32
    %c0_i32 = arith.constant 0 : i32
    %6 = arith.cmpi eq, %c8_i32, %c0_i32 : i32
    %c1_i32 = arith.constant 1 : i32
    %7 = arith.select %6, %c1_i32, %c8_i32 : i32
    %8 = vector.broadcast %7 : i32 to vector<1x64xi32>
    %9 = arith.remsi %5, %8 : vector<1x64xi32>
    %c0_i32_3 = arith.constant 0 : i32
    %10 = vector.broadcast %c0_i32_3 : i32 to vector<1x64xi32>
    %11 = arith.cmpi ne, %9, %10 : vector<1x64xi32>
    %c0_i32_4 = arith.constant 0 : i32
    %12 = vector.broadcast %c0_i32_4 : i32 to vector<1x64xi32>
    %13 = arith.cmpi slt, %9, %12 : vector<1x64xi32>
    %c0_i32_5 = arith.constant 0 : i32
    %14 = arith.cmpi slt, %7, %c0_i32_5 : i32
    %15 = vector.broadcast %14 : i1 to vector<1x64xi1>
    %16 = vector.broadcast %15 : vector<1x64xi1> to vector<1x64xi1>
    %17 = arith.xori %13, %16 : vector<1x64xi1>
    %18 = arith.andi %17, %11 : vector<1x64xi1>
    %19 = vector.broadcast %7 : i32 to vector<1x64xi32>
    %20 = arith.addi %9, %19 : vector<1x64xi32>
    %21 = arith.select %18, %20, %9 : vector<1x64xi1>, vector<1x64xi32>
    %c0_i32_6 = arith.constant 0 : i32
    %22 = vector.broadcast %c0_i32_6 : i32 to vector<1x64xi32>
    %23 = arith.cmpi eq, %21, %22 : vector<1x64xi32>
    %24 = vector.extract_strided_slice %4 {offsets = [9, 0], sizes = [3, 64], strides = [1, 1]} : vector<12x73xf32> to vector<3x64xf32>
    %cst_7 = arith.constant 0.000000e+00 : f32
    %25 = vector.shape_cast %23 : vector<1x64xi1> to vector<1x64xi1>
    %26 = vector.broadcast %25 : vector<1x64xi1> to vector<3x64xi1>
    %27 = vector.broadcast %cst_7 : f32 to vector<3x64xf32>
    %28 = arith.select %26, %27, %24 : vector<3x64xi1>, vector<3x64xf32>
    %29 = vector.extract_strided_slice %4 {offsets = [6, 1], sizes = [3, 64], strides = [1, 1]} : vector<12x73xf32> to vector<3x64xf32>
    %30 = vector.extract_strided_slice %4 {offsets = [9, 1], sizes = [3, 64], strides = [1, 1]} : vector<12x73xf32> to vector<3x64xf32>
    %31 = vector.extract_strided_slice %4 {offsets = [3, 8], sizes = [3, 64], strides = [1, 1]} : vector<12x73xf32> to vector<3x64xf32>
    %cst_8 = arith.constant 0.000000e+00 : f32
    %32 = vector.shape_cast %23 : vector<1x64xi1> to vector<1x64xi1>
    %33 = vector.broadcast %32 : vector<1x64xi1> to vector<3x64xi1>
    %34 = vector.broadcast %cst_8 : f32 to vector<3x64xf32>
    %35 = arith.select %33, %34, %31 : vector<3x64xi1>, vector<3x64xf32>
    %36 = vector.extract_strided_slice %4 {offsets = [0, 9], sizes = [3, 64], strides = [1, 1]} : vector<12x73xf32> to vector<3x64xf32>
    %37 = vector.extract_strided_slice %4 {offsets = [3, 9], sizes = [3, 64], strides = [1, 1]} : vector<12x73xf32> to vector<3x64xf32>
    %38 = vector.extract_strided_slice %4 {offsets = [9, 8], sizes = [3, 64], strides = [1, 1]} : vector<12x73xf32> to vector<3x64xf32>
    %cst_9 = arith.constant 0.000000e+00 : f32
    %39 = vector.shape_cast %23 : vector<1x64xi1> to vector<1x64xi1>
    %40 = vector.broadcast %39 : vector<1x64xi1> to vector<3x64xi1>
    %41 = vector.broadcast %cst_9 : f32 to vector<3x64xf32>
    %42 = arith.select %40, %41, %38 : vector<3x64xi1>, vector<3x64xf32>
    %43 = vector.extract_strided_slice %4 {offsets = [6, 9], sizes = [3, 64], strides = [1, 1]} : vector<12x73xf32> to vector<3x64xf32>
    %44 = vector.extract_strided_slice %4 {offsets = [9, 9], sizes = [3, 64], strides = [1, 1]} : vector<12x73xf32> to vector<3x64xf32>
    %45 = tpu.concatenate %28, %29, %30, %35, %36, %37, %42, %43, %44 in 0 : vector<3x64xf32>, vector<3x64xf32>, vector<3x64xf32>, vector<3x64xf32>, vector<3x64xf32>, vector<3x64xf32>, vector<3x64xf32>, vector<3x64xf32>, vector<3x64xf32> -> vector<27x64xf32>
    %c0_10 = arith.constant 0 : index
    %c0_11 = arith.constant 0 : index
    %46 = vector.load %arg3[%c0_10, %c0_11] : memref<32x27xf32, #tpu.memory_space<vmem>>, vector<32x27xf32>
    %cst_12 = arith.constant dense<0.000000e+00> : vector<32x64xf32>
    %47 = tpu.matmul %46, %45, %cst_12 {dimension_numbers = #tpu.dot_dimension_numbers<[1], [0], [0], [1], [0, 0, 1, 1], [], []>} : vector<32x27xf32>, vector<27x64xf32>, vector<32x64xf32> -> vector<32x64xf32>
    %c0_13 = arith.constant 0 : index
    %c0_14 = arith.constant 0 : index
    %48 = vector.load %arg4[%c0_13, %c0_14] : memref<32x1xf32, #tpu.memory_space<vmem>>, vector<32x1xf32>
    %49 = vector.broadcast %48 : vector<32x1xf32> to vector<32x64xf32>
    %50 = arith.addf %47, %49 : vector<32x64xf32>
    %c0_15 = arith.constant 0 : index
    %c0_16 = arith.constant 0 : index
    %51 = vector.load %arg5[%c0_15, %c0_16] : memref<32x64xf32, #tpu.memory_space<vmem>>, vector<32x64xf32>
    tpu.vector_store %arg5[%c0_15, %c0_16], %50 {strides = array<i32>} : memref<32x64xf32, #tpu.memory_space<vmem>>, vector<32x64xf32>,
    %cst_17 = arith.constant dense<0.000000e+00> : vector<32xf32>
    %52 = vector.multi_reduction <add>, %50, %cst_17 [1] : vector<32x64xf32> to vector<32xf32>
    %53 = vector.shape_cast %52 : vector<32xf32> to vector<32x1xf32>
    %54 = vector.shape_cast %53 : vector<32x1xf32> to vector<1x32x1xf32>
    %c0_18 = arith.constant 0 : index
    %c0_19 = arith.constant 0 : index
    %c0_20 = arith.constant 0 : index
    %55 = vector.load %arg6[%c0_18, %c0_19, %c0_20] : memref<1x32x1xf32, #tpu.memory_space<vmem>>, vector<1x32x1xf32>
    tpu.vector_store %arg6[%c0_18, %c0_19, %c0_20], %54 {strides = array<i32>} : memref<1x32x1xf32, #tpu.memory_space<vmem>>, vector<1x32x1xf32>,
    %56 = arith.mulf %50, %50 : vector<32x64xf32>
    %cst_21 = arith.constant dense<0.000000e+00> : vector<32xf32>
    %57 = vector.multi_reduction <add>, %56, %cst_21 [1] : vector<32x64xf32> to vector<32xf32>
    %58 = vector.shape_cast %57 : vector<32xf32> to vector<32x1xf32>
    %59 = vector.shape_cast %58 : vector<32x1xf32> to vector<1x32x1xf32>
    %c0_22 = arith.constant 0 : index
    %c0_23 = arith.constant 0 : index
    %c0_24 = arith.constant 0 : index
    %60 = vector.load %arg7[%c0_22, %c0_23, %c0_24] : memref<1x32x1xf32, #tpu.memory_space<vmem>>, vector<1x32x1xf32>
    tpu.vector_store %arg7[%c0_22, %c0_23, %c0_24], %59 {strides = array<i32>} : memref<1x32x1xf32, #tpu.memory_space<vmem>>, vector<1x32x1xf32>,
    return
  }
  func.func @transform_0(%arg0: i32, %arg1: i32) -> (i32, i32, i32) {
    %c0_i32 = arith.constant 0 : i32
    %c0_i32_0 = arith.constant 0 : i32
    return %arg0, %c0_i32, %arg1 : i32, i32, i32
  }
  func.func @transform_1(%arg0: i32, %arg1: i32) -> (i32, i32) {
    %c0_i32 = arith.constant 0 : i32
    %c0_i32_0 = arith.constant 0 : i32
    %c0_i32_1 = arith.constant 0 : i32
    return %c0_i32, %c0_i32_0 : i32, i32
  }
  func.func @transform_2(%arg0: i32, %arg1: i32) -> (i32, i32) {
    %c0_i32 = arith.constant 0 : i32
    %c0_i32_0 = arith.constant 0 : i32
    %c0_i32_1 = arith.constant 0 : i32
    return %c0_i32, %c0_i32_0 : i32, i32
  }
  func.func @transform_3(%arg0: i32, %arg1: i32) -> (i32, i32) {
    %c0_i32 = arith.constant 0 : i32
    return %arg0, %arg1 : i32, i32
  }
  func.func @transform_4(%arg0: i32, %arg1: i32) -> (i32, i32, i32) {
    %c1_i32 = arith.constant 1 : i32
    %0 = arith.muli %arg0, %c1_i32 : i32
    %1 = arith.addi %0, %arg1 : i32
    %c0_i32 = arith.constant 0 : i32
    %c0_i32_0 = arith.constant 0 : i32
    %c0_i32_1 = arith.constant 0 : i32
    return %1, %c0_i32, %c0_i32_0 : i32, i32, i32
  }
  func.func @transform_5(%arg0: i32, %arg1: i32) -> (i32, i32, i32) {
    %c1_i32 = arith.constant 1 : i32
    %0 = arith.muli %arg0, %c1_i32 : i32
    %1 = arith.addi %0, %arg1 : i32
    %c0_i32 = arith.constant 0 : i32
    %c0_i32_0 = arith.constant 0 : i32
    %c0_i32_1 = arith.constant 0 : i32
    return %1, %c0_i32, %c0_i32_0 : i32, i32, i32
  }
}

module attributes {stable_mosaic.version = 11 : i64} {
  func.func @_bn_conv_kernel(%arg0: i32, %arg1: i32, %arg2: memref<32x64xf32, #tpu.memory_space<vmem>>, %arg3: memref<32x288xf32, #tpu.memory_space<vmem>>, %arg4: memref<32x1xf32, #tpu.memory_space<vmem>>, %arg5: memref<32x1xf32, #tpu.memory_space<vmem>>, %arg6: memref<32x1xf32, #tpu.memory_space<vmem>>, %arg7: memref<32x64xf32, #tpu.memory_space<vmem>>) attributes {dimension_semantics = [#tpu.dimension_semantics<parallel>, #tpu.dimension_semantics<parallel>], iteration_bounds = array<i64: 2, 1>, scalar_prefetch = 0 : i64, scratch_operands = 0 : i64, tpu.core_type = #tpu.core_type<tc>, window_params = [{transform_indices = @transform_0, window_bounds = array<i64: 32, 64>}, {pipeline_mode = #tpu.pipeline_mode<synchronous>, transform_indices = @transform_1, window_bounds = array<i64: 32, 288>}, {pipeline_mode = #tpu.pipeline_mode<synchronous>, transform_indices = @transform_2, window_bounds = array<i64: 32, 1>}, {pipeline_mode = #tpu.pipeline_mode<synchronous>, transform_indices = @transform_3, window_bounds = array<i64: 32, 1>}, {pipeline_mode = #tpu.pipeline_mode<synchronous>, transform_indices = @transform_4, window_bounds = array<i64: 32, 1>}, {transform_indices = @transform_5, window_bounds = array<i64: 32, 64>}]} {
    %c0 = arith.constant 0 : index
    %c0_0 = arith.constant 0 : index
    %0 = vector.load %arg5[%c0, %c0_0] : memref<32x1xf32, #tpu.memory_space<vmem>>, vector<32x1xf32>
    %c0_1 = arith.constant 0 : index
    %c0_2 = arith.constant 0 : index
    %1 = vector.load %arg6[%c0_1, %c0_2] : memref<32x1xf32, #tpu.memory_space<vmem>>, vector<32x1xf32>
    %c0_3 = arith.constant 0 : index
    %c0_4 = arith.constant 0 : index
    %2 = vector.load %arg2[%c0_3, %c0_4] : memref<32x64xf32, #tpu.memory_space<vmem>>, vector<32x64xf32>
    %3 = vector.broadcast %0 : vector<32x1xf32> to vector<32x64xf32>
    %4 = arith.mulf %2, %3 : vector<32x64xf32>
    %5 = vector.broadcast %1 : vector<32x1xf32> to vector<32x64xf32>
    %6 = arith.addf %4, %5 : vector<32x64xf32>
    %cst = arith.constant 0.000000e+00 : f32
    %7 = vector.broadcast %cst : f32 to vector<32x64xf32>
    %8 = arith.maximumf %6, %7 : vector<32x64xf32>
    %cst_5 = arith.constant 0.000000e+00 : f32
    %9 = vector.broadcast %cst_5 : f32 to vector<32x8xf32>
    %cst_6 = arith.constant 0.000000e+00 : f32
    %10 = vector.broadcast %cst_6 : f32 to vector<32x8xf32>
    %cst_7 = arith.constant 0.000000e+00 : f32
    %11 = vector.broadcast %cst_7 : f32 to vector<32x1xf32>
    %12 = tpu.concatenate %11, %9, %8, %10, %11 in 1 : vector<32x1xf32>, vector<32x8xf32>, vector<32x64xf32>, vector<32x8xf32>, vector<32x1xf32> -> vector<32x82xf32>
    %13 = tpu.iota {dimensions = array<i32: 1>} : vector<1x64xi32>
    %c8_i32 = arith.constant 8 : i32
    %c0_i32 = arith.constant 0 : i32
    %14 = arith.cmpi eq, %c8_i32, %c0_i32 : i32
    %c1_i32 = arith.constant 1 : i32
    %15 = arith.select %14, %c1_i32, %c8_i32 : i32
    %16 = vector.broadcast %15 : i32 to vector<1x64xi32>
    %17 = arith.remsi %13, %16 : vector<1x64xi32>
    %c0_i32_8 = arith.constant 0 : i32
    %18 = vector.broadcast %c0_i32_8 : i32 to vector<1x64xi32>
    %19 = arith.cmpi ne, %17, %18 : vector<1x64xi32>
    %c0_i32_9 = arith.constant 0 : i32
    %20 = vector.broadcast %c0_i32_9 : i32 to vector<1x64xi32>
    %21 = arith.cmpi slt, %17, %20 : vector<1x64xi32>
    %c0_i32_10 = arith.constant 0 : i32
    %22 = arith.cmpi slt, %15, %c0_i32_10 : i32
    %23 = vector.broadcast %22 : i1 to vector<1x64xi1>
    %24 = vector.broadcast %23 : vector<1x64xi1> to vector<1x64xi1>
    %25 = arith.xori %21, %24 : vector<1x64xi1>
    %26 = arith.andi %25, %19 : vector<1x64xi1>
    %27 = vector.broadcast %15 : i32 to vector<1x64xi32>
    %28 = arith.addi %17, %27 : vector<1x64xi32>
    %29 = arith.select %26, %28, %17 : vector<1x64xi1>, vector<1x64xi32>
    %c0_i32_11 = arith.constant 0 : i32
    %30 = vector.broadcast %c0_i32_11 : i32 to vector<1x64xi32>
    %31 = arith.cmpi eq, %29, %30 : vector<1x64xi32>
    %c7_i32 = arith.constant 7 : i32
    %32 = vector.broadcast %c7_i32 : i32 to vector<1x64xi32>
    %33 = arith.cmpi eq, %29, %32 : vector<1x64xi32>
    %cst_12 = arith.constant 0.000000e+00 : f32
    %34 = vector.broadcast %cst_12 : f32 to vector<32x64xf32>
    %35 = vector.extract_strided_slice %12 {offsets = [0, 0], sizes = [32, 64], strides = [1, 1]} : vector<32x82xf32> to vector<32x64xf32>
    %cst_13 = arith.constant 0.000000e+00 : f32
    %36 = vector.shape_cast %31 : vector<1x64xi1> to vector<1x64xi1>
    %37 = vector.broadcast %36 : vector<1x64xi1> to vector<32x64xi1>
    %38 = vector.broadcast %cst_13 : f32 to vector<32x64xf32>
    %39 = arith.select %37, %38, %35 : vector<32x64xi1>, vector<32x64xf32>
    %40 = vector.extract_strided_slice %12 {offsets = [0, 1], sizes = [32, 64], strides = [1, 1]} : vector<32x82xf32> to vector<32x64xf32>
    %41 = vector.extract_strided_slice %12 {offsets = [0, 2], sizes = [32, 64], strides = [1, 1]} : vector<32x82xf32> to vector<32x64xf32>
    %cst_14 = arith.constant 0.000000e+00 : f32
    %42 = vector.shape_cast %33 : vector<1x64xi1> to vector<1x64xi1>
    %43 = vector.broadcast %42 : vector<1x64xi1> to vector<32x64xi1>
    %44 = vector.broadcast %cst_14 : f32 to vector<32x64xf32>
    %45 = arith.select %43, %44, %41 : vector<32x64xi1>, vector<32x64xf32>
    %46 = tpu.concatenate %39, %40, %45 in 0 : vector<32x64xf32>, vector<32x64xf32>, vector<32x64xf32> -> vector<96x64xf32>
    %c0_15 = arith.constant 0 : index
    %c0_16 = arith.constant 0 : index
    %47 = vector.load %arg3[%c0_15, %c0_16] : memref<32x288xf32, #tpu.memory_space<vmem>>, vector<32x96xf32>
    %cst_17 = arith.constant dense<0.000000e+00> : vector<32x64xf32>
    %48 = tpu.matmul %47, %46, %cst_17 {dimension_numbers = #tpu.dot_dimension_numbers<[1], [0], [0], [1], [0, 0, 1, 1], [], []>} : vector<32x96xf32>, vector<96x64xf32>, vector<32x64xf32> -> vector<32x64xf32>
    %49 = arith.addf %34, %48 : vector<32x64xf32>
    %50 = vector.extract_strided_slice %12 {offsets = [0, 8], sizes = [32, 64], strides = [1, 1]} : vector<32x82xf32> to vector<32x64xf32>
    %cst_18 = arith.constant 0.000000e+00 : f32
    %51 = vector.shape_cast %31 : vector<1x64xi1> to vector<1x64xi1>
    %52 = vector.broadcast %51 : vector<1x64xi1> to vector<32x64xi1>
    %53 = vector.broadcast %cst_18 : f32 to vector<32x64xf32>
    %54 = arith.select %52, %53, %50 : vector<32x64xi1>, vector<32x64xf32>
    %55 = vector.extract_strided_slice %12 {offsets = [0, 9], sizes = [32, 64], strides = [1, 1]} : vector<32x82xf32> to vector<32x64xf32>
    %56 = vector.extract_strided_slice %12 {offsets = [0, 10], sizes = [32, 64], strides = [1, 1]} : vector<32x82xf32> to vector<32x64xf32>
    %cst_19 = arith.constant 0.000000e+00 : f32
    %57 = vector.shape_cast %33 : vector<1x64xi1> to vector<1x64xi1>
    %58 = vector.broadcast %57 : vector<1x64xi1> to vector<32x64xi1>
    %59 = vector.broadcast %cst_19 : f32 to vector<32x64xf32>
    %60 = arith.select %58, %59, %56 : vector<32x64xi1>, vector<32x64xf32>
    %61 = tpu.concatenate %54, %55, %60 in 0 : vector<32x64xf32>, vector<32x64xf32>, vector<32x64xf32> -> vector<96x64xf32>
    %c0_20 = arith.constant 0 : index
    %c96 = arith.constant 96 : index
    %62 = vector.load %arg3[%c0_20, %c96] : memref<32x288xf32, #tpu.memory_space<vmem>>, vector<32x96xf32>
    %cst_21 = arith.constant dense<0.000000e+00> : vector<32x64xf32>
    %63 = tpu.matmul %62, %61, %cst_21 {dimension_numbers = #tpu.dot_dimension_numbers<[1], [0], [0], [1], [0, 0, 1, 1], [], []>} : vector<32x96xf32>, vector<96x64xf32>, vector<32x64xf32> -> vector<32x64xf32>
    %64 = arith.addf %49, %63 : vector<32x64xf32>
    %65 = vector.extract_strided_slice %12 {offsets = [0, 16], sizes = [32, 64], strides = [1, 1]} : vector<32x82xf32> to vector<32x64xf32>
    %cst_22 = arith.constant 0.000000e+00 : f32
    %66 = vector.shape_cast %31 : vector<1x64xi1> to vector<1x64xi1>
    %67 = vector.broadcast %66 : vector<1x64xi1> to vector<32x64xi1>
    %68 = vector.broadcast %cst_22 : f32 to vector<32x64xf32>
    %69 = arith.select %67, %68, %65 : vector<32x64xi1>, vector<32x64xf32>
    %70 = vector.extract_strided_slice %12 {offsets = [0, 17], sizes = [32, 64], strides = [1, 1]} : vector<32x82xf32> to vector<32x64xf32>
    %71 = vector.extract_strided_slice %12 {offsets = [0, 18], sizes = [32, 64], strides = [1, 1]} : vector<32x82xf32> to vector<32x64xf32>
    %cst_23 = arith.constant 0.000000e+00 : f32
    %72 = vector.shape_cast %33 : vector<1x64xi1> to vector<1x64xi1>
    %73 = vector.broadcast %72 : vector<1x64xi1> to vector<32x64xi1>
    %74 = vector.broadcast %cst_23 : f32 to vector<32x64xf32>
    %75 = arith.select %73, %74, %71 : vector<32x64xi1>, vector<32x64xf32>
    %76 = tpu.concatenate %69, %70, %75 in 0 : vector<32x64xf32>, vector<32x64xf32>, vector<32x64xf32> -> vector<96x64xf32>
    %c0_24 = arith.constant 0 : index
    %c192 = arith.constant 192 : index
    %77 = vector.load %arg3[%c0_24, %c192] : memref<32x288xf32, #tpu.memory_space<vmem>>, vector<32x96xf32>
    %cst_25 = arith.constant dense<0.000000e+00> : vector<32x64xf32>
    %78 = tpu.matmul %77, %76, %cst_25 {dimension_numbers = #tpu.dot_dimension_numbers<[1], [0], [0], [1], [0, 0, 1, 1], [], []>} : vector<32x96xf32>, vector<96x64xf32>, vector<32x64xf32> -> vector<32x64xf32>
    %79 = arith.addf %64, %78 : vector<32x64xf32>
    %c0_26 = arith.constant 0 : index
    %c0_27 = arith.constant 0 : index
    %80 = vector.load %arg4[%c0_26, %c0_27] : memref<32x1xf32, #tpu.memory_space<vmem>>, vector<32x1xf32>
    %81 = vector.broadcast %80 : vector<32x1xf32> to vector<32x64xf32>
    %82 = arith.addf %79, %81 : vector<32x64xf32>
    %cst_28 = arith.constant 0.000000e+00 : f32
    %83 = vector.broadcast %cst_28 : f32 to vector<32x64xf32>
    %84 = arith.maximumf %82, %83 : vector<32x64xf32>
    %c0_29 = arith.constant 0 : index
    %c0_30 = arith.constant 0 : index
    %85 = vector.load %arg7[%c0_29, %c0_30] : memref<32x64xf32, #tpu.memory_space<vmem>>, vector<32x64xf32>
    tpu.vector_store %arg7[%c0_29, %c0_30], %84 {strides = array<i32>} : memref<32x64xf32, #tpu.memory_space<vmem>>, vector<32x64xf32>,
    return
  }
  func.func @transform_0(%arg0: i32, %arg1: i32) -> (i32, i32) {
    %c0_i32 = arith.constant 0 : i32
    return %arg0, %arg1 : i32, i32
  }
  func.func @transform_1(%arg0: i32, %arg1: i32) -> (i32, i32) {
    %c0_i32 = arith.constant 0 : i32
    %c0_i32_0 = arith.constant 0 : i32
    %c0_i32_1 = arith.constant 0 : i32
    return %c0_i32, %c0_i32_0 : i32, i32
  }
  func.func @transform_2(%arg0: i32, %arg1: i32) -> (i32, i32) {
    %c0_i32 = arith.constant 0 : i32
    %c0_i32_0 = arith.constant 0 : i32
    %c0_i32_1 = arith.constant 0 : i32
    return %c0_i32, %c0_i32_0 : i32, i32
  }
  func.func @transform_3(%arg0: i32, %arg1: i32) -> (i32, i32) {
    %c0_i32 = arith.constant 0 : i32
    %c0_i32_0 = arith.constant 0 : i32
    %c0_i32_1 = arith.constant 0 : i32
    return %c0_i32, %c0_i32_0 : i32, i32
  }
  func.func @transform_4(%arg0: i32, %arg1: i32) -> (i32, i32) {
    %c0_i32 = arith.constant 0 : i32
    %c0_i32_0 = arith.constant 0 : i32
    %c0_i32_1 = arith.constant 0 : i32
    return %c0_i32, %c0_i32_0 : i32, i32
  }
  func.func @transform_5(%arg0: i32, %arg1: i32) -> (i32, i32) {
    %c0_i32 = arith.constant 0 : i32
    return %arg0, %arg1 : i32, i32
  }
}

</mosaic_0001>

<bundles_post_ra>
// kernel: model_forward.2
= control target key start
LH: loop header
LB: loop body
LE: loop exit
PB: predicated region body
PF: predicated region fallthrough
CT: control target
= control target key end

     0   :  { %s780_s18 = smov 0   ;;  %s782_s19 = smov 0   ;;  %s891_s0 = inlined_call_operand.vmem [shape: f32[2,12,64], index: 0, kind: input, shape index: {}]   ;;  %s892_s1 = inlined_call_operand.vmem [shape: f32[32,27], index: 1, kind: input, shape index: {}]   ;;  %s893_s2 = inlined_call_operand.vmem [shape: f32[32,1], index: 2, kind: input, shape index: {}]   ;;  %s894_s3 = inlined_call_operand.vmem [shape: f32[64,64], index: 3, kind: output, shape index: {0}]   ;;  %s895_s4 = inlined_call_operand.vmem [shape: f32[2,32,1], index: 4, kind: output, shape index: {1}]   ;;  %s896_s5 = inlined_call_operand.vmem [shape: f32[2,32,1], index: 5, kind: output, shape index: {2}]  }
   0x1   :  { %s784_s20 = smov 0  }
   0x2 LB: > { %s28_s21 = sadd.s32 1, %s739_s19  ;;  %p648_p0 = scmp.ge.s32.totalorder %s743_s20, 1  ;;  %s743_s20 = sphi %s784_s20, %s16_s20   ;;  %s739_s19 = sphi %s782_s19, %s900_s19   ;;  %s735_s18 = sphi %s780_s18, %s899_s18  }
   0x3   : > { %p30_p1 = scmp.ge.s32.totalorder %s28_s21, 2  ;;  %p215_p2 = scmp.lt.s32.totalorder %s743_s20, 3 }
   0x5   : > { %s902_s21 = smov (%p30_p1, %s28_s21), 0  ;;  %p216_p3 = pnand %p648_p0, %p215_p2 }
   0x6   : > { %p261_p4 = scmp.lt.s32.totalorder (!%p216_p3), %s735_s18, 1  ;;  %s745_s27 = smov (!%p216_p3), 9  }
   0x7   : > { %219 = sbr.rel (%p216_p3) target bundleno = 548 (0x224), region = 32  ;;  %s746_s28 = smov (!%p216_p3), 119  }
   0x8   : > { %s747_s29 = smov (!%p216_p3), 127   ;;  %s748_s30 = smov (!%p216_p3), 120  }
   0xc   : > { %s802_s22 = scalar_select %p261_p4, %s735_s18, 1  ;;  %vm302_vm0 = vcmask 72704   ;;  %vm338_vm1 = vcmask 1044480   ;;  %vm357_vm2 = vcmask 1046528   ;;  %vm365_vm3 = vcmask 1042432   ;;  %v381_v16 = vld [vmem:[%s893_s2] sm:$0xff] }
   0xd   : > { %v749_v17 = vmov 0   ;;  %v383_v18 = vld [vmem:[%s893_s2 + $0x10] sm:$0xff]  ;;  %v382_v19 = vld [vmem:[%s893_s2 + $0x8] sm:$0xff]  ;;  %v305_v20 = vlaneseq  ;;  %v384_v22 = vld [vmem:[%s893_s2 + $0x18] sm:$0xff]  ;;  %vm369_vm5 = vcmask 1040384   ;;  %vm374_vm6 = vcmask 1041408  }
   0xe   : > { %s664_s23 = sshll.u32 %s802_s22, 4  ;;  %718 = vset.pattern.permute.xlu1 %v749_v17  ;;  %720 = vset.pattern.permute.xlu0 %v749_v17  ;;  %vm371_vm7 = vcmask 1043456   ;;  %vm367_vm8 = vcmask 1045504   ;;  %v377_v46 = vld [vmem:[%s892_s1] sm:$0xff]  ;;  %vm405_vm9 = vcmask 220160   ;;  %v379_v47 = vld [vmem:[%s892_s1 + $0x10] sm:$0xff] }
   0xf   : > { %s268_s26 = scalar_lea.vmem %s891_s0, %s664_s23  ;;  %719 = vset.pattern.permute.xlu2 %v749_v17  ;;  %v306_v21 = vand.u32 127, %v305_v20  ;;  %v380_v48 = vld [vmem:[%s892_s1 + $0x18] sm:$0xff]  ;;  %v378_v49 = vld [vmem:[%s892_s1 + $0x8] sm:$0xff]  ;;  %vm449_vm10 = vcmask 523264   ;;  %vm466_vm11 = vcmask 7168  }
  0x10   : > { %v293_v0 = vld [vmem:[%s268_s26 + $0x8] sm:$0xf]  ;;  %v292_v1 = vld [vmem:[%s268_s26] sm:$0xff] }
  0x11   : > { %298 = vrot.lane.b32.xlu0 %v293_v0, %s745_s27  ;;  %v311_v23 = vand.u32 7, %v306_v21 }
  0x13   : > { %vm826_vm4 = vcmp.eq.s32.totalorder %v311_v23, 0 }
  0x19   : > { %296 = vrot.lane.b32.xlu0 %v292_v1, %s745_s27  ;;  %s651_s27 = sshll.u32 %s735_s18, 2  ;;  %s665_s18 = sshll.u32 %s802_s22, 5 }
  0x1a   : > { %p270_p5 = scmp.lt.s32.totalorder %s651_s27, 7  ;;  %s283_s9 = scalar_lea.vmem %s895_s4, %s665_s18 }
  0x1b   : > { %s290_s12 = scalar_lea.vmem %s896_s5, %s665_s18 }
  0x1c   : > { %s904_s27 = smov (!%p270_p5, %s651_s27), 7 }
  0x83   : > { %v299_v2 = vpop.permute.xlu0 %298 }
  0x84   : > { %v304_v3 = vsel %vm302_vm0, 0.0, %v299_v2 }
  0x85   : > { %v330_v4 = vrot.slane %v304_v3, 1  ;;  %v339_v7 = vrot.slane %v304_v3, 3  ;;  %v322_v31 = vsel %vm826_vm4, 0.0, %v304_v3 }
  0x86   : > { %v336_v39 = vrot.slane %v322_v31, 1 }
  0x87   : > { %363 = vrot.lane.b32.xlu2 %v330_v4, %s746_s28 }
  0x8b   : > { %v297_v5 = vpop.permute.xlu0 %296 }
  0x8c   : > { %v303_v6 = vsel %vm302_vm0, 0.0, %v297_v5 }
  0x8d   : > { %v324_v8 = vrot.slane %v303_v6, 3  ;;  %v358_v11 = vrot.slane %v303_v6, 1  ;;  %v350_v12 = vrot.slane %v303_v6, 4 }
  0x8f   : > { %344 = vrot.lane.b32.xlu2 %v339_v7, %s747_s29  ;;  %v340_v9 = vsel %vm338_vm1, %v324_v8, %v339_v7  ;;  %v708_v10 = vpack.i.bf16 %v324_v8, %v330_v4  ;;  %v359_v13 = vsel %vm357_vm2, %v358_v11, %v330_v4 }
  0x90   : > { %341 = vrot.lane.b32.xlu0 %v340_v9, %s747_s29  ;;  %v713_v14 = vpack.i.bf16 %v359_v13, %v350_v12 }
  0x91   : > { %709 = vrot.lane.b32.xlu1 %v708_v10, %s748_s30 }
  0x97   : > { %392 = vperm.xlu2 %719, %v382_v19  }
  0x98   : > { %397 = vperm.xlu0 %720, %v383_v18  }
  0x99   : > { %714 = vrot.lane.b32.xlu1 %v713_v14, %s746_s28  ;;  %s652_s28 = sshll.u32 %s904_s27, 3 }
  0x9a   : > { %s276_s6 = scalar_lea.vmem %s894_s3, %s652_s28 }
  0xa1   : > { %387 = vperm.xlu1 %718, %v381_v16  }
  0xa9   : > { %402 = vperm.xlu1 %718, %v384_v22  }
  0xe1   : > { %v364_v15 = vpop.permute.xlu2 %363 }
  0xe2   : > { %657 = vmatpush.msk.msra.mxu0 %vm365_vm3, %v364_v15  ;;  %667 = vmatpush.msk.msra.mxu1 %vm365_vm3, %v364_v15 }
  0xe3   : > { %668 = vmatpush.msk.msra.mxu2 %vm365_vm3, %v364_v15  ;;  %669 = vmatpush.msk.msra.mxu3 %vm365_vm3, %v364_v15 }
  0xe9   : > { %v345_v33 = vpop.permute.xlu2 %344 }
  0xf1   : > { %v393_v51 = vpop.permute.xlu2 %392 }
 0x102   : > { %v342_v37 = vpop.permute.xlu0 %341 }
 0x103   : > { %v710_v24 = vpop.permute.xlu1 %709  ;;  %v366_v43 = vsel %vm365_vm3, %v336_v39, %v342_v37 }
 0x104   : > { %v712_v25 = vunpack.i.h.bf16 %v710_v24  ;;  %v711_v27 = vunpack.i.l.bf16 %v710_v24  ;;  %v368_v45 = vsel %vm367_vm8, %v366_v43, %v345_v33 }
 0x106   : > { %v328_v28 = vsel %vm826_vm4, 0.0, %v712_v25  ;;  %v334_v30 = vsel %vm826_vm4, 0.0, %v711_v27 }
 0x107   : > { %v348_v29 = vrot.slane %v328_v28, 7  ;;  %v355_v34 = vrot.slane %v334_v30, 6 }
 0x109   : > { %v370_v38 = vsel %vm369_vm5, %v345_v33, %v348_v29 }
 0x10a   : > { %v398_v57 = vpop.permute.xlu0 %397 }
 0x10b   : > { %v715_v32 = vpop.permute.xlu1 %714 }
 0x10c   : > { %v717_v35 = vunpack.i.h.bf16 %v715_v32  ;;  %v716_v36 = vunpack.i.l.bf16 %v715_v32 }
 0x10e   : > { %v375_v40 = vsel %vm374_vm6, %v716_v36, %v355_v34  ;;  %v372_v41 = vsel %vm371_vm7, %v370_v38, %v716_v36 }
 0x10f   : > { %v376_v42 = vsel %vm338_vm1, %v375_v40, %v717_v35  ;;  %v373_v44 = vsel %vm357_vm2, %v372_v41, %v716_v36 }
 0x110   : > { %433 = vmatpush.msra.mxu0 %v376_v42  ;;  %670 = vmatpush.msra.mxu1 %v376_v42 }
 0x111   : > { %671 = vmatpush.msra.mxu2 %v376_v42  ;;  %672 = vmatpush.msra.mxu3 %v376_v42 }
 0x112   : > { %434 = vmatpush.msra.mxu0 %v373_v44  ;;  %673 = vmatpush.msra.mxu1 %v373_v44 }
 0x113   : > { %674 = vmatpush.msra.mxu2 %v373_v44  ;;  %675 = vmatpush.msra.mxu3 %v373_v44  ;;  %v388_v50 = vpop.permute.xlu1 %387 }
 0x114   : > { %435 = vmatpush.msra.mxu0 %v368_v45  ;;  %676 = vmatpush.msra.mxu1 %v368_v45 }
 0x115   : > { %677 = vmatpush.msra.mxu2 %v368_v45  ;;  %678 = vmatpush.msra.mxu3 %v368_v45 }
 0x116   : > { %658 = vmatmul.msk.f32.vlgmr.msra.gmra.mxu0 %vm405_vm9, %v377_v46  ;;  %660 = vmatmul.msk.f32.vlgmr.msra.gmra.mxu2 %vm405_vm9, %v379_v47 }
 0x117   : > { %661 = vmatmul.msk.f32.vlgmr.msra.gmra.mxu3 %vm405_vm9, %v380_v48  ;;  %659 = vmatmul.msk.f32.vlgmr.msra.gmra.mxu1 %vm405_vm9, %v378_v49 }
 0x11b   : > { %v403_v61 = vpop.permute.xlu1 %402 }
 0x193   : > { %v437_v52 = vpop.f32.mrf.mxu0 }
 0x194   : > { %v438_v53 = vadd.f32 %v437_v52, %v388_v50  ;;  %v440_v54 = vpop.f32.mrf.mxu1 }
 0x195   : > { %v441_v55 = vadd.f32 %v440_v54, %v393_v51 }
 0x196   : > { %450 = vst.msk [vmem:[%s276_s6] sm:$0xff] %vm449_vm10, %v438_v53  ;;  %v454_v56 = vsel %vm449_vm10, %v438_v53, 0.0  ;;  %v471_v0 = vmul.f32 %v438_v53, %v438_v53 }
 0x197   : > { %455 = vadd.xlane.f32.xlu2 %v454_v56  ;;  %451 = vst.msk [vmem:[%s276_s6 + $0x8] sm:$0xff] %vm449_vm10, %v441_v55  ;;  %v457_v58 = vsel %vm449_vm10, %v441_v55, 0.0  ;;  %v472_v60 = vmul.f32 %v441_v55, %v441_v55 }
 0x198   : > { %458 = vadd.xlane.f32.xlu1 %v457_v58  ;;  %v475_v4 = vsel %vm449_vm10, %v471_v0, 0.0 }
 0x199   : > { %v443_v59 = vpop.f32.mrf.mxu2  ;;  %v478_v3 = vsel %vm449_vm10, %v472_v60, 0.0 }
 0x19a   : > { %v446_v62 = vpop.f32.mrf.mxu3  ;;  %v444_v63 = vadd.f32 %v443_v59, %v398_v57 }
 0x19b   : > { %v447_v1 = vadd.f32 %v446_v62, %v403_v61 }
 0x19c   : > { %452 = vst.msk [vmem:[%s276_s6 + $0x10] sm:$0xff] %vm449_vm10, %v444_v63  ;;  %v460_v2 = vsel %vm449_vm10, %v444_v63, 0.0  ;;  %v473_v8 = vmul.f32 %v444_v63, %v444_v63 }
 0x19d   : > { %453 = vst.msk [vmem:[%s276_s6 + $0x18] sm:$0xff] %vm449_vm10, %v447_v1  ;;  %461 = vadd.xlane.f32.xlu0 %v460_v2  ;;  %v474_v5 = vmul.f32 %v447_v1, %v447_v1  ;;  %v463_v7 = vsel %vm449_vm10, %v447_v1, 0.0 }
 0x19e   : > { %v481_v9 = vsel %vm449_vm10, %v473_v8, 0.0 }
 0x19f   : > { %476 = vadd.xlane.f32.xlu2 %v475_v4  ;;  %v484_v6 = vsel %vm449_vm10, %v474_v5, 0.0 }
 0x1a0   : > { %479 = vadd.xlane.f32.xlu1 %v478_v3 }
 0x1a5   : > { %485 = vadd.xlane.f32.xlu0 %v484_v6 }
 0x1a7   : > { %464 = vadd.xlane.f32.xlu2 %v463_v7 }
 0x1af   : > { %482 = vadd.xlane.f32.xlu2 %v481_v9 }
 0x20a   : > { %v456_v10 = vpop.xlane.xlu2 %455 }
 0x20b   : > { %467 = vst.msk [vmem:[%s283_s9] sm:$0xff] %vm466_vm11, %v456_v10  ;;  %v459_v11 = vpop.xlane.xlu1 %458 }
 0x20c   : > { %468 = vst.msk [vmem:[%s283_s9 + $0x8] sm:$0xff] %vm466_vm11, %v459_v11 }
 0x210   : > { %v462_v12 = vpop.xlane.xlu0 %461 }
 0x211   : > { %469 = vst.msk [vmem:[%s283_s9 + $0x10] sm:$0xff] %vm466_vm11, %v462_v12 }
 0x212   : > { %v477_v13 = vpop.xlane.xlu2 %476 }
 0x213   : > { %487 = vst.msk [vmem:[%s290_s12] sm:$0xff] %vm466_vm11, %v477_v13  ;;  %v480_v14 = vpop.xlane.xlu1 %479 }
 0x214   : > { %488 = vst.msk [vmem:[%s290_s12 + $0x8] sm:$0xff] %vm466_vm11, %v480_v14 }
 0x218   : > { %v486_v15 = vpop.xlane.xlu0 %485 }
 0x219   : > { %490 = vst.msk [vmem:[%s290_s12 + $0x18] sm:$0xff] %vm466_vm11, %v486_v15 }
 0x21a   : > { %v465_v16 = vpop.xlane.xlu2 %464 }
 0x21b   : > { %470 = vst.msk [vmem:[%s283_s9 + $0x18] sm:$0xff] %vm466_vm11, %v465_v16 }
 0x222   : > { %v483_v17 = vpop.xlane.xlu2 %482 }
 0x223   : > { %489 = vst.msk [vmem:[%s290_s12 + $0x10] sm:$0xff] %vm466_vm11, %v483_v17 }
 0x224 PF: > { %s16_s20 = sadd.s32 1, %s743_s20   ;;  %s899_s18 = smov %s739_s19 }
 0x225   : > { %p13_p6 = scmp.ge.s32.totalorder %s16_s20, 4   ;;  %s900_s19 = smov %s902_s21 }
 0x227   :  { %15 = sbr.rel (!%p13_p6) target bundleno = 2 (0x2), region = 86 }

// kernel: model_forward.3
= control target key start
LH: loop header
LB: loop body
LE: loop exit
PB: predicated region body
PF: predicated region fallthrough
CT: control target
= control target key end

     0   :  { %s1022_s18 = smov 0   ;;  %s1024_s19 = smov 0   ;;  %s1350_s0 = inlined_call_operand.vmem [shape: f32[64,64], index: 0, kind: input, shape index: {}]   ;;  %s1351_s1 = inlined_call_operand.vmem [shape: f32[32,288], index: 1, kind: input, shape index: {}]   ;;  %s1352_s2 = inlined_call_operand.vmem [shape: f32[32,1], index: 2, kind: input, shape index: {}]   ;;  %s1353_s3 = inlined_call_operand.vmem [shape: f32[32,1], index: 3, kind: input, shape index: {}]   ;;  %s1354_s4 = inlined_call_operand.vmem [shape: f32[32,1], index: 4, kind: input, shape index: {}]   ;;  %s1355_s5 = inlined_call_operand.vmem [shape: f32[64,64], index: 5, kind: output, shape index: {}]  }
   0x1   :  { %s1026_s20 = smov 0  }
   0x2 LB: > { %s27_s21 = sadd.s32 1, %s974_s19  ;;  %p806_p0 = scmp.ge.s32.totalorder %s978_s20, 1  ;;  %s978_s20 = sphi %s1026_s20, %s15_s20   ;;  %s974_s19 = sphi %s1024_s19, %s1361_s19   ;;  %s970_s18 = sphi %s1022_s18, %s1360_s18  }
   0x3   : > { %p29_p1 = scmp.ge.s32.totalorder %s27_s21, 2  ;;  %p207_p2 = scmp.lt.s32.totalorder %s978_s20, 3 }
   0x5   : > { %s1363_s21 = smov (%p29_p1, %s27_s21), 0  ;;  %p208_p3 = pnand %p806_p0, %p207_p2 }
   0x6   : > { %s981_s15 = smov (!%p208_p3), 64   ;;  %s982_s26 = smov (!%p208_p3), 32  }
   0x7   : > { %211 = sbr.rel (%p208_p3) target bundleno = 602 (0x25a), region = 40  ;;  %s807_s6 = sshll.u32 (!%p208_p3), %s970_s18, 2 }
   0x8   : > { %p242_p4 = scmp.lt.s32.totalorder (!%p208_p3), %s807_s6, 7  ;;  %s983_s18 = smov (!%p208_p3), 9  }
   0x9   : > { %s984_s11 = smov (!%p208_p3), 110   ;;  %s985_s12 = smov (!%p208_p3), 126  }
   0xa   : > { %s986_s13 = smov (!%p208_p3), 118   ;;  %s987_s14 = smov (!%p208_p3), 111  }
   0xb   : > { %s988_s16 = smov (!%p208_p3), 112   ;;  %s989_s17 = smov (!%p208_p3), 127  }
   0xc   : > { %v266_v0 = vld [vmem:[%s1354_s4 + $0x18] sm:$0xff]  ;;  %v980_v2 = vmov 0   ;;  %v265_v3 = vld [vmem:[%s1354_s4 + $0x10] sm:$0xff]  ;;  %v260_v5 = vld [vmem:[%s1353_s3 + $0x8] sm:$0xff]  ;;  %s1365_s6 = smov (!%p242_p4, %s807_s6), 7  ;;  %vm642_vm0 = vcmask 523264  }
   0xd   : > { %v262_v1 = vld [vmem:[%s1353_s3 + $0x18] sm:$0xff]  ;;  %924 = vset.pattern.permute.xlu1 %v980_v2  ;;  %923 = vset.pattern.permute.xlu0 %v980_v2  ;;  %v261_v4 = vld [vmem:[%s1353_s3 + $0x10] sm:$0xff]  ;;  %v259_v6 = vld [vmem:[%s1353_s3] sm:$0xff]  ;;  %s808_s7 = sshll.u32 %s1365_s6, 3  ;;  %vm339_vm1 = vcmask 72704   ;;  %vm344_vm2 = vcmask 596992  }
   0xe   : > { %312 = vperm.xlu1 %924, %v266_v0   ;;  %288 = vperm.xlu0 %923, %v262_v1   ;;  %v264_v7 = vld [vmem:[%s1354_s4 + $0x8] sm:$0xff]  ;;  %v263_v8 = vld [vmem:[%s1354_s4] sm:$0xff]  ;;  %v611_v10 = vld [vmem:[%s1351_s1 + $0x10] sm:$0xff]  ;;  %s248_s10 = scalar_lea.vmem %s1350_s0, %s808_s7  ;;  %vm349_vm3 = vcmask 662528   ;;  %s990_s22 = smov 119   ;;  %v354_v1 = vlaneseq  ;;  %vm491_vm6 = vcmask 785408  }
   0xf   : > { %925 = vset.pattern.permute.xlu2 %v980_v2  ;;  %v1069_v9 = vld [vmem:[%s1351_s1 + $0x8] sm:$0xff]  ;;  %v1079_v11 = vld [vmem:[%s1351_s1 + $0x18] sm:$0xff]  ;;  %v459_v12 = vld [vmem:[%s1351_s1 + $0x20] sm:$0xff]  ;;  %s991_s23 = smov 120   ;;  %vm486_vm7 = vcmask 261120   ;;  %s257_s27 = scalar_lea.vmem %s1355_s5, %s808_s7 }
  0x10   : > { %307 = vperm.xlu2 %925, %v265_v3   ;;  %v1091_v13 = vld [vmem:[%s1351_s1 + $0x30] sm:$0xff]  ;;  %v613_v14 = vld [vmem:[%s1351_s1 + $0x28] sm:$0xff]  ;;  %v270_v15 = vld [vmem:[%s248_s10 + $0x18] sm:$0xff]  ;;  %v1174_v3 = vand.u32 127, %v354_v1 }
  0x11   : > { %v269_v22 = vld [vmem:[%s248_s10 + $0x10] sm:$0xff]  ;;  %v268_v27 = vld [vmem:[%s248_s10 + $0x8] sm:$0xff]  ;;  %v267_v29 = vld [vmem:[%s248_s10] sm:$0xff] }
  0x12   : > { %v615_v2 = vld [vmem:[%s1351_s1 + $0x40] sm:$0xff] }
  0x16   : > { %283 = vperm.xlu0 %923, %v261_v4   ;;  %278 = vperm.xlu1 %924, %v260_v5   ;;  %v360_v4 = vand.u32 7, %v1174_v3  ;;  %v616_v5 = vld [vmem:[%s1351_s1 + $0x50] sm:$0xff] }
  0x18   : > { %273 = vperm.xlu2 %925, %v259_v6   ;;  %vm1185_vm4 = vcmp.ne.s32.totalorder %v360_v4, 7  ;;  %vm1259_vm5 = vcmp.ne.s32.totalorder %v360_v4, 0 }
  0x1e   : > { %302 = vperm.xlu0 %923, %v264_v7   ;;  %297 = vperm.xlu1 %924, %v263_v8  }
  0x20   : > { %626 = vrot.lane.b32.xlu2 %v1069_v9, %s981_s15 }
  0x26   : > { %628 = vrot.lane.b32.xlu0 %v611_v10, %s981_s15  ;;  %474 = vrot.lane.b32.xlu1 %v1079_v11, %s982_s26  ;;  %v460_v10 = vld [vmem:[%s1351_s1 + $0x38] sm:$0xff] }
  0x28   : > { %476 = vrot.lane.b32.xlu2 %v459_v12, %s982_s26 }
  0x2e   : > { %630 = vrot.lane.b32.xlu0 %v459_v12, %s981_s15  ;;  %632 = vrot.lane.b32.xlu1 %v613_v14, %s981_s15  ;;  %v690_v12 = vld [vmem:[%s1352_s2 + $0x10] sm:$0xff] }
  0x30   : > { %478 = vrot.lane.b32.xlu2 %v1091_v13, %s982_s26 }
  0x6a   : > { %v308_v19 = vpop.permute.xlu2 %307 }
  0x72   : > { %v274_v28 = vpop.permute.xlu2 %273 }
  0x73   : > { %v291_v32 = vmul.f32 %v274_v28, %v267_v29 }
  0x7a   : > { %v1109_v39 = vpop.permute.xlu2 %626 }
  0x80   : > { %v313_v16 = vpop.permute.xlu1 %312  ;;  %v289_v17 = vpop.permute.xlu0 %288 }
  0x81   : > { %v294_v18 = vmul.f32 %v289_v17, %v270_v15  ;;  %v617_v15 = vld [vmem:[%s1351_s1 + $0x58] sm:$0xff] }
  0x82   : > { %v1111_v40 = vpop.permute.xlu2 %476 }
  0x83   : > { %v318_v20 = vadd.f32 %v313_v16, %v294_v18  ;;  %v1223_v16 = vld [vmem:[%s1351_s1] sm:$0xff] }
  0x84   : > { %v688_v18 = vld [vmem:[%s1352_s2] sm:$0xff] }
  0x85   : > { %v322_v21 = vmax.f32 %v318_v20, 0.0 }
  0x87   : > { %333 = vrot.lane.b32.xlu2 %v322_v21, %s983_s18  ;;  %v691_v21 = vld [vmem:[%s1352_s2 + $0x18] sm:$0xff] }
  0x88   : > { %v284_v23 = vpop.permute.xlu0 %283  ;;  %v279_v24 = vpop.permute.xlu1 %278 }
  0x89   : > { %v293_v25 = vmul.f32 %v284_v23, %v269_v22  ;;  %v292_v31 = vmul.f32 %v279_v24, %v268_v27 }
  0x8a   : > { %v1117_v43 = vpop.permute.xlu2 %478 }
  0x8b   : > { %v317_v26 = vadd.f32 %v308_v19, %v293_v25  ;;  %v689_v19 = vld [vmem:[%s1352_s2 + $0x8] sm:$0xff] }
  0x8d   : > { %v321_v30 = vmax.f32 %v317_v26, 0.0 }
  0x8f   : > { %331 = vrot.lane.b32.xlu0 %v321_v30, %s983_s18 }
  0x90   : > { %v303_v33 = vpop.permute.xlu0 %302  ;;  %v298_v34 = vpop.permute.xlu1 %297 }
  0x91   : > { %v316_v35 = vadd.f32 %v303_v33, %v292_v31  ;;  %v315_v36 = vadd.f32 %v298_v34, %v291_v32 }
  0x93   : > { %v320_v37 = vmax.f32 %v316_v35, 0.0  ;;  %v319_v38 = vmax.f32 %v315_v36, 0.0 }
  0x95   : > { %329 = vrot.lane.b32.xlu1 %v320_v37, %s983_s18  ;;  %327 = vrot.lane.b32.xlu2 %v319_v38, %s983_s18 }
  0x98   : > { %v1113_v41 = vpop.permute.xlu0 %628  ;;  %v1115_v42 = vpop.permute.xlu1 %474 }
  0xa0   : > { %v631_v44 = vpop.permute.xlu0 %630  ;;  %v633_v45 = vpop.permute.xlu1 %632 }
  0xa1   : > { %v1120_v46 = vsel %vm642_vm0, %v631_v44, %v633_v45 }
  0xe1   : > { %v334_v47 = vpop.permute.xlu2 %333 }
  0xe2   : > { %v343_v48 = vsel %vm339_vm1, 0.0, %v334_v47 }
  0xe3   : > { %v348_v49 = vsel %vm344_vm2, %v343_v48, 0.0 }
  0xe4   : > { %v1125_v50 = vsel %vm349_vm3, %v348_v49, 0.0 }
  0xe5   : > { %588 = vrot.lane.b32.xlu0 %v1125_v50, %s984_s11  ;;  %388 = vrot.lane.b32.xlu2 %v1125_v50, %s985_s12 }
  0xed   : > { %436 = vrot.lane.b32.xlu2 %v1125_v50, %s986_s13 }
  0xef   : > { %v328_v57 = vpop.permute.xlu2 %327 }
  0xf0   : > { %v340_v60 = vsel %vm339_vm1, 0.0, %v328_v57 }
  0xf1   : > { %v345_v61 = vsel %vm344_vm2, %v340_v60, 0.0 }
  0xf2   : > { %v1153_v62 = vsel %vm349_vm3, %v345_v61, 0.0 }
 0x101   : > { %v332_v51 = vpop.permute.xlu0 %331 }
 0x102   : > { %v342_v52 = vsel %vm339_vm1, 0.0, %v332_v51 }
 0x103   : > { %v347_v53 = vsel %vm344_vm2, %v342_v52, 0.0 }
 0x104   : > { %v1135_v54 = vsel %vm349_vm3, %v347_v53, 0.0 }
 0x105   : > { %586 = vrot.lane.b32.xlu1 %v1135_v54, %s984_s11  ;;  %434 = vrot.lane.b32.xlu2 %v1135_v54, %s986_s13  ;;  %v926_v0 = vpack.i.bf16 %v1135_v54, %v1125_v50 }
 0x107   : > { %v330_v55 = vpop.permute.xlu1 %329 }
 0x108   : > { %v341_v56 = vsel %vm339_vm1, 0.0, %v330_v55 }
 0x109   : > { %v346_v58 = vsel %vm344_vm2, %v341_v56, 0.0 }
 0x10a   : > { %v1143_v59 = vsel %vm349_vm3, %v346_v58, 0.0 }
 0x10b   : > { %584 = vrot.lane.b32.xlu0 %v1143_v59, %s984_s11  ;;  %v936_v63 = vpack.i.bf16 %v1153_v62, %v1143_v59 }
 0x10d   : > { %386 = vrot.lane.b32.xlu1 %v1135_v54, %s985_s12  ;;  %432 = vrot.lane.b32.xlu2 %v1143_v59, %s986_s13 }
 0x113   : > { %582 = vrot.lane.b32.xlu0 %v1153_v62, %s984_s11 }
 0x115   : > { %384 = vrot.lane.b32.xlu1 %v1143_v59, %s985_s12  ;;  %937 = vrot.lane.b32.xlu2 %v936_v63, %s987_s14 }
 0x11b   : > { %927 = vrot.lane.b32.xlu0 %v926_v0, %s987_s14 }
 0x11d   : > { %572 = vrot.lane.b32.xlu2 %v1125_v50, %s988_s16  ;;  %382 = vrot.lane.b32.xlu1 %v1153_v62, %s985_s12 }
 0x123   : > { %932 = vrot.lane.b32.xlu0 %v926_v0, %s989_s17 }
 0x125   : > { %568 = vrot.lane.b32.xlu2 %v1143_v59, %s988_s16  ;;  %430 = vrot.lane.b32.xlu1 %v1153_v62, %s986_s13 }
 0x12b   : > { %942 = vrot.lane.b32.xlu0 %v926_v0, %s990_s22 }
 0x12d   : > { %416 = vrot.lane.b32.xlu2 %v1143_v59, %s991_s23  ;;  %947 = vrot.lane.b32.xlu1 %v936_v63, %s989_s17 }
 0x133   : > { %952 = vrot.lane.b32.xlu0 %v936_v63, %s990_s22 }
 0x135   : > { %636 = vrot.lane.b32.xlu2 %v615_v2, %s981_s15  ;;  %570 = vrot.lane.b32.xlu1 %v1135_v54, %s988_s16 }
 0x13b   : > { %420 = vrot.lane.b32.xlu0 %v1125_v50, %s991_s23 }
 0x13d   : > { %638 = vrot.lane.b32.xlu2 %v616_v5, %s981_s15  ;;  %566 = vrot.lane.b32.xlu1 %v1153_v62, %s988_s16 }
 0x13f   : > { %v389_v7 = vpop.permute.xlu2 %388 }
 0x140   : > { %832 = vmatpush.msk.msra.mxu1 %vm1185_vm4, %v389_v7 }
 0x143   : > { %414 = vrot.lane.b32.xlu0 %v1153_v62, %s991_s23 }
 0x145   : > { %472 = vrot.lane.b32.xlu2 %v1069_v9, %s982_s26  ;;  %418 = vrot.lane.b32.xlu1 %v1135_v54, %s991_s23  ;;  %v1210_v9 = vld [vmem:[%s1351_s1 + $0x48] sm:$0xff] }
 0x147   : > { %v437_v8 = vpop.permute.xlu2 %436 }
 0x148   : > { %812 = vmatpush.msk.msra.mxu0 %vm1185_vm4, %v437_v8  ;;  %875 = vmatpush.msk.msra.mxu3 %vm1185_vm4, %v437_v8 }
 0x14b   : > { %480 = vrot.lane.b32.xlu0 %v460_v10, %s982_s26 }
 0x14d   : > { %704 = vperm.xlu2 %925, %v690_v12   ;;  %634 = vrot.lane.b32.xlu1 %v460_v10, %s981_s15 }
 0x153   : > { %482 = vrot.lane.b32.xlu0 %v1210_v9, %s982_s26 }
 0x155   : > { %484 = vrot.lane.b32.xlu1 %v616_v5, %s982_s26 }
 0x157   : > { %v589_v14 = vpop.permute.xlu0 %588 }
 0x158   : > { %852 = vmatpush.msk.msra.mxu2 %vm1185_vm4, %v589_v14 }
 0x15b   : > { %640 = vrot.lane.b32.xlu0 %v617_v15, %s981_s15 }
 0x15d   : > { %470 = vrot.lane.b32.xlu1 %v1223_v16, %s982_s26 }
 0x15f   : > { %v435_v17 = vpop.permute.xlu2 %434 }
 0x160   : > { %814 = vmatpush.msk.msra.mxu0 %vm1185_vm4, %v435_v17  ;;  %876 = vmatpush.msk.msra.mxu3 %vm1185_vm4, %v435_v17 }
 0x163   : > { %694 = vperm.xlu0 %923, %v688_v18  }
 0x165   : > { %699 = vperm.xlu1 %924, %v689_v19  }
 0x167   : > { %v433_v20 = vpop.permute.xlu2 %432 }
 0x168   : > { %816 = vmatpush.msk.msra.mxu0 %vm1185_vm4, %v433_v20  ;;  %877 = vmatpush.msk.msra.mxu3 %vm1185_vm4, %v433_v20 }
 0x16b   : > { %709 = vperm.xlu0 %923, %v691_v21  }
 0x16f   : > { %v938_v28 = vpop.permute.xlu2 %937 }
 0x170   : > { %v939_v32 = vunpack.i.l.bf16 %v938_v28  ;;  %v940_v33 = vunpack.i.h.bf16 %v938_v28 }
 0x177   : > { %v587_v22 = vpop.permute.xlu1 %586  ;;  %v573_v38 = vpop.permute.xlu2 %572 }
 0x178   : > { %854 = vmatpush.msk.msra.mxu2 %vm1185_vm4, %v587_v22 }
 0x17d   : > { %v585_v23 = vpop.permute.xlu0 %584 }
 0x17e   : > { %856 = vmatpush.msk.msra.mxu2 %vm1185_vm4, %v585_v23 }
 0x17f   : > { %v387_v24 = vpop.permute.xlu1 %386  ;;  %v569_v56 = vpop.permute.xlu2 %568 }
 0x180   : > { %834 = vmatpush.msk.msra.mxu1 %vm1185_vm4, %v387_v24 }
 0x185   : > { %v583_v25 = vpop.permute.xlu0 %582 }
 0x186   : > { %858 = vmatpush.msk.msra.mxu2 %vm1185_vm4, %v583_v25 }
 0x187   : > { %v385_v26 = vpop.permute.xlu1 %384  ;;  %v417_v60 = vpop.permute.xlu2 %416 }
 0x188   : > { %836 = vmatpush.msk.msra.mxu1 %vm1185_vm4, %v385_v26 }
 0x18d   : > { %v928_v27 = vpop.permute.xlu0 %927 }
 0x18e   : > { %v929_v29 = vunpack.i.l.bf16 %v928_v27  ;;  %v930_v31 = vunpack.i.h.bf16 %v928_v27 }
 0x18f   : > { %v383_v30 = vpop.permute.xlu1 %382 }
 0x190   : > { %838 = vmatpush.msk.msra.mxu1 %vm1185_vm4, %v383_v30  ;;  %663 = vmatpush.msra.mxu2 %v929_v29 }
 0x192   : > { %664 = vmatpush.msra.mxu2 %v930_v31 }
 0x194   : > { %665 = vmatpush.msra.mxu2 %v939_v32 }
 0x195   : > { %v933_v34 = vpop.permute.xlu0 %932 }
 0x196   : > { %666 = vmatpush.msra.mxu2 %v940_v33  ;;  %v934_v35 = vunpack.i.l.bf16 %v933_v34  ;;  %v935_v44 = vunpack.i.h.bf16 %v933_v34 }
 0x197   : > { %v431_v37 = vpop.permute.xlu1 %430 }
 0x198   : > { %818 = vmatpush.msk.msra.mxu0 %vm1185_vm4, %v431_v37  ;;  %878 = vmatpush.msk.msra.mxu3 %vm1185_vm4, %v431_v37 }
 0x199   : > { %545 = vmatpush.msra.mxu1 %v934_v35  ;;  %860 = vmatpush.msk.msra.mxu2 %vm1259_vm5, %v573_v38 }
 0x19b   : > { %546 = vmatpush.msra.mxu1 %v935_v44 }
 0x19d   : > { %v943_v45 = vpop.permute.xlu0 %942 }
 0x19e   : > { %v944_v47 = vunpack.i.l.bf16 %v943_v45  ;;  %v945_v49 = vunpack.i.h.bf16 %v943_v45 }
 0x19f   : > { %v948_v48 = vpop.permute.xlu1 %947 }
 0x1a0   : > { %508 = vmatpush.msra.mxu0 %v944_v47  ;;  %879 = vmatpush.msra.mxu3 %v944_v47  ;;  %v949_v51 = vunpack.i.l.bf16 %v948_v48  ;;  %v950_v52 = vunpack.i.h.bf16 %v948_v48 }
 0x1a2   : > { %509 = vmatpush.msra.mxu0 %v945_v49  ;;  %880 = vmatpush.msra.mxu3 %v945_v49 }
 0x1a3   : > { %547 = vmatpush.msra.mxu1 %v949_v51 }
 0x1a5   : > { %548 = vmatpush.msra.mxu1 %v950_v52  ;;  %v953_v53 = vpop.permute.xlu0 %952 }
 0x1a6   : > { %v954_v55 = vunpack.i.l.bf16 %v953_v53  ;;  %v955_v58 = vunpack.i.h.bf16 %v953_v53 }
 0x1a7   : > { %840 = vmatpush.msk.msra.mxu1 %vm1259_vm5, %v1125_v50  ;;  %v571_v57 = vpop.permute.xlu1 %570 }
 0x1a8   : > { %510 = vmatpush.msra.mxu0 %v954_v55  ;;  %881 = vmatpush.msra.mxu3 %v954_v55 }
 0x1a9   : > { %842 = vmatpush.msk.msra.mxu1 %vm1259_vm5, %v1135_v54  ;;  %862 = vmatpush.msk.msra.mxu2 %vm1259_vm5, %v571_v57 }
 0x1aa   : > { %511 = vmatpush.msra.mxu0 %v955_v58  ;;  %882 = vmatpush.msra.mxu3 %v955_v58 }
 0x1ab   : > { %844 = vmatpush.msk.msra.mxu1 %vm1259_vm5, %v1143_v59  ;;  %864 = vmatpush.msk.msra.mxu2 %vm1259_vm5, %v569_v56  ;;  %v643_v59 = vsel %vm642_vm0, %v1109_v39, %v1113_v41  ;;  %v637_v39 = vpop.permute.xlu2 %636 }
 0x1ad   : > { %846 = vmatpush.msk.msra.mxu1 %vm1259_vm5, %v1153_v62  ;;  %v421_v50 = vpop.permute.xlu0 %420 }
 0x1ae   : > { %820 = vmatpush.msk.msra.mxu0 %vm1259_vm5, %v421_v50  ;;  %883 = vmatpush.msk.msra.mxu3 %vm1259_vm5, %v421_v50 }
 0x1af   : > { %v567_v54 = vpop.permute.xlu1 %566  ;;  %847 = vmatmul.msk.f32.vlgmr.msra.gmra.mxu1 %vm491_vm6, %v1223_v16 }
 0x1b0   : > { %866 = vmatpush.msk.msra.mxu2 %vm1259_vm5, %v567_v54 }
 0x1b1   : > { %867 = vmatmul.msk.f32.vlgmr.msra.gmra.mxu2 %vm491_vm6, %v643_v59 }
 0x1b3   : > { %v639_v1 = vpop.permute.xlu2 %638 }
 0x1b5   : > { %v415_v61 = vpop.permute.xlu0 %414 }
 0x1b7   : > { %v419_v62 = vpop.permute.xlu1 %418  ;;  %848 = vmatmul.msk.f32.gmra.mxu1 %vm491_vm6, %v1079_v11  ;;  %v488_v11 = vsel %vm486_vm7, %v1115_v42, %v1111_v40 }
 0x1b8   : > { %822 = vmatpush.msk.msra.mxu0 %vm1259_vm5, %v419_v62  ;;  %884 = vmatpush.msk.msra.mxu3 %vm1259_vm5, %v419_v62 }
 0x1b9   : > { %868 = vmatmul.msk.f32.gmra.mxu2 %vm491_vm6, %v1120_v46 }
 0x1ba   : > { %824 = vmatpush.msk.msra.mxu0 %vm1259_vm5, %v417_v60  ;;  %885 = vmatpush.msk.msra.mxu3 %vm1259_vm5, %v417_v60 }
 0x1bb   : > { %v473_v4 = vpop.permute.xlu2 %472 }
 0x1bc   : > { %826 = vmatpush.msk.msra.mxu0 %vm1259_vm5, %v415_v61  ;;  %886 = vmatpush.msk.msra.mxu3 %vm1259_vm5, %v415_v61 }
 0x1bd   : > { %v481_v41 = vpop.permute.xlu0 %480  ;;  %828 = vmatmul.msk.f32.vlgmr.msra.gmra.mxu3 %vm491_vm6, %v488_v11 }
 0x1be   : > { %v489_v0 = vsel %vm486_vm7, %v1117_v43, %v481_v41 }
 0x1bf   : > { %v635_v46 = vpop.permute.xlu1 %634  ;;  %849 = vmatmul.msk.f32.gmra.mxu1 %vm491_vm6, %v1091_v13 }
 0x1c0   : > { %v645_v63 = vsel %vm642_vm0, %v635_v46, %v637_v39 }
 0x1c1   : > { %869 = vmatmul.msk.f32.gmra.mxu2 %vm491_vm6, %v645_v63 }
 0x1c3   : > { %v705_v28 = vpop.permute.xlu2 %704 }
 0x1c5   : > { %v483_v2 = vpop.permute.xlu0 %482  ;;  %829 = vmatmul.msk.f32.gmra.mxu3 %vm491_vm6, %v489_v0 }
 0x1c7   : > { %v485_v3 = vpop.permute.xlu1 %484  ;;  %850 = vmatmul.msk.f32.gmra.mxu1 %vm491_vm6, %v1210_v9 }
 0x1c8   : > { %v490_v40 = vsel %vm486_vm7, %v483_v2, %v485_v3 }
 0x1cd   : > { %v641_v42 = vpop.permute.xlu0 %640  ;;  %830 = vmatmul.msk.f32.gmra.mxu3 %vm491_vm6, %v490_v40 }
 0x1ce   : > { %v646_v13 = vsel %vm642_vm0, %v639_v1, %v641_v42 }
 0x1cf   : > { %v471_v5 = vpop.permute.xlu1 %470  ;;  %870 = vmatmul.msk.f32.gmra.mxu2 %vm491_vm6, %v646_v13 }
 0x1d0   : > { %v487_v43 = vsel %vm486_vm7, %v471_v5, %v473_v4 }
 0x1d1   : > { %827 = vmatmul.msk.f32.vlgmr.msra.gmra.mxu0 %vm491_vm6, %v487_v43 }
 0x1d5   : > { %v695_v15 = vpop.permute.xlu0 %694 }
 0x1d7   : > { %v700_v25 = vpop.permute.xlu1 %699 }
 0x1dd   : > { %v710_v34 = vpop.permute.xlu0 %709 }
 0x22c   : > { %v554_v6 = vpop.f32.mrf.mxu1 }
 0x234   : > { %v672_v7 = vpop.f32.mrf.mxu2  ;;  %v557_v8 = vpop.f32.mrf.mxu1 }
 0x23c   : > { %v675_v10 = vpop.f32.mrf.mxu2  ;;  %v560_v9 = vpop.f32.mrf.mxu1 }
 0x240   : > { %v520_v12 = vpop.f32.mrf.mxu3 }
 0x241   : > { %v558_v16 = vadd.f32 %v557_v8, %v520_v12 }
 0x243   : > { %v685_v19 = vadd.f32 %v675_v10, %v558_v16 }
 0x244   : > { %v678_v17 = vpop.f32.mrf.mxu2  ;;  %v563_v21 = vpop.f32.mrf.mxu1 }
 0x245   : > { %v713_v29 = vadd.f32 %v700_v25, %v685_v19 }
 0x247   : > { %v717_v37 = vmax.f32 %v713_v29, 0.0 }
 0x248   : > { %v523_v14 = vpop.f32.mrf.mxu3 }
 0x249   : > { %v561_v18 = vadd.f32 %v560_v9, %v523_v14  ;;  %721 = vst.msk [vmem:[%s257_s27 + $0x8] sm:$0xff] %vm642_vm0, %v717_v37 }
 0x24b   : > { %v686_v22 = vadd.f32 %v678_v17, %v561_v18 }
 0x24d   : > { %v714_v31 = vadd.f32 %v705_v28, %v686_v22 }
 0x24e   : > { %v517_v20 = vpop.f32.mrf.mxu0 }
 0x24f   : > { %v555_v23 = vadd.f32 %v554_v6, %v517_v20  ;;  %v718_v38 = vmax.f32 %v714_v31, 0.0 }
 0x250   : > { %v526_v24 = vpop.f32.mrf.mxu3 }
 0x251   : > { %v684_v26 = vadd.f32 %v672_v7, %v555_v23  ;;  %v564_v27 = vadd.f32 %v563_v21, %v526_v24  ;;  %722 = vst.msk [vmem:[%s257_s27 + $0x10] sm:$0xff] %vm642_vm0, %v718_v38 }
 0x252   : > { %v681_v30 = vpop.f32.mrf.mxu2 }
 0x253   : > { %v712_v32 = vadd.f32 %v695_v15, %v684_v26  ;;  %v687_v33 = vadd.f32 %v681_v30, %v564_v27 }
 0x255   : > { %v716_v35 = vmax.f32 %v712_v32, 0.0  ;;  %v715_v36 = vadd.f32 %v710_v34, %v687_v33 }
 0x257   : > { %720 = vst.msk [vmem:[%s257_s27] sm:$0xff] %vm642_vm0, %v716_v35  ;;  %v719_v44 = vmax.f32 %v715_v36, 0.0 }
 0x259   : > { %723 = vst.msk [vmem:[%s257_s27 + $0x18] sm:$0xff] %vm642_vm0, %v719_v44 }
 0x25a PF: > { %s15_s20 = sadd.s32 1, %s978_s20   ;;  %s1360_s18 = smov %s974_s19 }
 0x25b   : > { %p12_p5 = scmp.ge.s32.totalorder %s15_s20, 4   ;;  %s1361_s19 = smov %s1363_s21 }
 0x25d   :  { %14 = sbr.rel (!%p12_p5) target bundleno = 2 (0x2), region = 70 }

</bundles_post_ra>
